<compile_context>
chip_gen: v6e
topology: v6e:2x2x1
jax: 0.10.0
libtpu: 0.0.40
codegen_flags: <defaults>
</compile_context>

<pallas_src>
import jax
import jax.numpy as jnp
from jax import lax
from jax.experimental import pallas as pl
from jax.experimental.pallas import tpu as pltpu

BN_EPS = 1e-5
LANE = 128


def _round_up(n, m=LANE):
    return ((n + m - 1) // m) * m


# --------------------------------------------------------------------------- #
# Kernel
# --------------------------------------------------------------------------- #
def make_generator_kernel(offs, num_blocks, matmul_dtype):
    """Kernel closure.

    Ref order: x_pad, [w_pad_i, gamma_pad_i, beta_pad_i] * num_blocks,
               wf_pad, bf_pad, out.
    Weights are pre-padded/transposed to (K_padded, N_padded); gammas/betas/bias are
    (1, N_padded) with zero padding. `offs` are the 128-aligned segment row offsets.
    """
    offs = tuple(int(o) for o in offs)

    def kernel(*refs):
        x_ref = refs[0]
        out_ref = refs[-1]
        params = refs[1:-1]

        def mdot(a, w):  # MXU matmul, f32 accumulation
            return jnp.dot(a, w, preferred_element_type=jnp.float32)

        # Segment list: segs[0] = padded noise input, segs[i+1] = block i output.
        segs = [x_ref[...]]                       # already matmul_dtype from the wrapper
        inv_n = 1.0 / float(segs[0].shape[0])     # static batch size

        idx = 0
        for i in range(num_blocks):
            w_ref, g_ref, be_ref = params[idx:idx + 3]
            idx += 3

            # Linear over the "concatenated" input via per-segment accumulation.
            # (Linear bias is omitted -- cancelled by the BN mean subtraction.)
            z = mdot(segs[0], w_ref[offs[0]:offs[1], :])
            for j in range(1, i + 1):
                z = z + mdot(segs[j], w_ref[offs[j]:offs[j + 1], :])

            # Training-mode BatchNorm1d: one-pass batch stats (biased variance),
            # affine folded into a single scale/shift.
            s1 = jnp.sum(z, axis=0, keepdims=True)
            s2 = jnp.sum(z * z, axis=0, keepdims=True)
            mean = s1 * inv_n
            var = jnp.maximum(s2 * inv_n - mean * mean, 0.0)
            scale = g_ref[...] * lax.rsqrt(var + BN_EPS)      # EUP rsqrt
            shift = be_ref[...] - mean * scale
            act = jnp.maximum(z * scale + shift, 0.0)         # ReLU

            # Padded columns stay exactly 0 (zero weight cols + zero gamma/beta pad),
            # so the next block's padded-K rows contribute nothing.
            segs.append(act.astype(matmul_dtype))

        # Final projection, also distributed over segments; lane-dense (padded) output.
        wf_ref, bf_ref = params[idx], params[idx + 1]
        y = mdot(segs[0], wf_ref[offs[0]:offs[1], :])
        for j in range(1, num_blocks + 1):
            y = y + mdot(segs[j], wf_ref[offs[j]:offs[j + 1], :])
        out_ref[...] = (y + bf_ref[...]).astype(out_ref.dtype)

    return kernel


# --------------------------------------------------------------------------- #
# One-time parameter preparation (hoisted out of the per-step forward)
# --------------------------------------------------------------------------- #
def prepare_generator_params(res_params, final_params, input_dim, dims, data_dim,
                             matmul_dtype=jnp.float32):
    """Pads / transposes PyTorch-convention params once into the kernel layout."""
    widths = [input_dim] + list(dims)                 # real segment widths
    pwidths = [_round_up(w) for w in widths]          # 128-lane padded widths
    offs = [0]
    for pw in pwidths:
        offs.append(offs[-1] + pw)
    orig_offs = [0]
    for w in widths:
        orig_offs.append(orig_offs[-1] + w)

    flat = []
    for i, (w, _b, gamma, beta) in enumerate(res_params):
        # NOTE: Linear bias _b is intentionally dropped -- BN batch-mean cancels it.
        dim_i = int(w.shape[0])
        pdim_i = _round_up(dim_i)
        k_tot = offs[i + 1]
        w_pad = jnp.zeros((k_tot, pdim_i), jnp.float32)
        for j in range(i + 1):
            blk = w[:, orig_offs[j]:orig_offs[j + 1]].T        # (width_j, dim_i)
            w_pad = w_pad.at[offs[j]:offs[j] + widths[j], :dim_i].set(blk)
        g_pad = jnp.zeros((1, pdim_i), jnp.float32).at[0, :dim_i].set(gamma)
        be_pad = jnp.zeros((1, pdim_i), jnp.float32).at[0, :dim_i].set(beta)
        flat += [w_pad.astype(matmul_dtype), g_pad, be_pad]

    wf, bf = final_params
    pdata = _round_up(data_dim)
    wf_pad = jnp.zeros((offs[-1], pdata), jnp.float32)
    for j in range(len(widths)):
        blk = wf[:, orig_offs[j]:orig_offs[j + 1]].T
        wf_pad = wf_pad.at[offs[j]:offs[j] + widths[j], :data_dim].set(blk)
    bf_pad = jnp.zeros((1, pdata), jnp.float32).at[0, :data_dim].set(bf)
    flat += [wf_pad.astype(matmul_dtype), bf_pad]

    meta = dict(input_dim=int(input_dim), dims=tuple(int(d) for d in dims),
                data_dim=int(data_dim), widths=widths, pwidths=pwidths,
                offs=tuple(offs), pdata=int(pdata), matmul_dtype=matmul_dtype)
    return flat, meta


# --------------------------------------------------------------------------- #
# Forward wrapper
# --------------------------------------------------------------------------- #
def generator_forward(x, prepared):
    flat, meta = prepared
    offs = meta["offs"]
    pwidths = meta["pwidths"]
    pdata = meta["pdata"]
    data_dim = meta["data_dim"]
    num_blocks = len(meta["dims"])
    mdtype = meta["matmul_dtype"]
    B = x.shape[0]
    pw0 = pwidths[0]

    # Lane-pad the noise input once (tiny) so segment 0 is 128-aligned and dense.
    x_pad = jnp.zeros((B, pw0), mdtype).at[:, :meta["input_dim"]].set(x.astype(mdtype))

    kernel = make_generator_kernel(offs, num_blocks, mdtype)
    vmem = pl.BlockSpec(memory_space=pltpu.MemorySpace.VMEM)

    # VMEM budget + cost estimate (matmul flops dominate).
    bpe_m = jnp.dtype(mdtype).itemsize
    param_bytes = sum(int(p.size) * p.dtype.itemsize for p in flat)
    act_bytes = B * offs[-1] * (4 + bpe_m)              # f32 intermediates + mdtype copies
    io_bytes = B * pw0 * bpe_m + B * pdata * 4
    needed = param_bytes + act_bytes + io_bytes
    vmem_limit = int(min(max(4 * needed, 8 << 20), 100 << 20))

    flops = 0
    for i in range(num_blocks):
        flops += 2 * B * offs[i + 1] * pwidths[i + 1]
    flops += 2 * B * offs[-1] * pdata
    cost = pl.CostEstimate(flops=int(flops),
                           transcendentals=int(sum(pwidths[1:])),
                           bytes_accessed=int(param_bytes + io_bytes))

    out = pl.pallas_call(
        kernel,
        out_shape=jax.ShapeDtypeStruct((B, pdata), jnp.float32),
        in_specs=[vmem] * (1 + len(flat)),
        out_specs=vmem,
        compiler_params=pltpu.CompilerParams(vmem_limit_bytes=vmem_limit),
        cost_estimate=cost,
    )(x_pad, *flat)

    return out[:, :data_dim]


# --------------------------------------------------------------------------- #
# Init + pure-JAX reference (PyTorch semantics, biases included)
# --------------------------------------------------------------------------- #
def init_generator_params(key, input_dim, dims, data_dim):
    params = []
    in_dim = input_dim
    for dim in dims:
        key, kw, kb = jax.random.split(key, 3)
        w = jax.random.normal(kw, (dim, in_dim), jnp.float32) * 0.05   # (out, in) like nn.Linear
        b = jax.random.normal(kb, (dim,), jnp.float32) * 0.05
        gamma = jnp.ones((dim,), jnp.float32)
        beta = jnp.zeros((dim,), jnp.float32)
        params.append((w, b, gamma, beta))
        in_dim += dim
    key, kw, kb = jax.random.split(key, 3)
    wf = jax.random.normal(kw, (data_dim, in_dim), jnp.float32) * 0.05
    bf = jax.random.normal(kb, (data_dim,), jnp.float32) * 0.05
    return params, (wf, bf)


def generator_reference(x, res_params, final_params):
    h = x
    for (w, b, g, be) in res_params:
        z = h @ w.T + b
        mean = jnp.mean(z, axis=0, keepdims=True)
        var = jnp.mean((z - mean) ** 2, axis=0, keepdims=True)
        act = jnp.maximum((z - mean) / jnp.sqrt(var + BN_EPS) * g + be, 0.0)
        h = jnp.concatenate([h, act], axis=1)
    wf, bf = final_params
    return h @ wf.T + bf


if __name__ == "__main__":
    B = 8
    INPUT_DIM = 32
    DIMS = (32, 32)
    DATA_DIM = 16

    key = jax.random.PRNGKey(0)
    key, kx = jax.random.split(key)
    x = jax.random.normal(kx, (B, INPUT_DIM), jnp.float32)
    res_params, final_params = init_generator_params(key, INPUT_DIM, DIMS, DATA_DIM)

    ref = generator_reference(x, res_params, final_params)

    # f32 MXU operands: exact-semantics path.
    prepared_f32 = prepare_generator_params(res_params, final_params,
                                            INPUT_DIM, DIMS, DATA_DIM,
                                            matmul_dtype=jnp.float32)
    out = jax.block_until_ready(generator_forward(x, prepared_f32))
    assert out.shape == (B, DATA_DIM), out.shape
    assert jnp.allclose(out, ref, atol=1e-4, rtol=1e-4), float(jnp.max(jnp.abs(out - ref)))

    # bf16 MXU operands (recommended on v6e/v7x at realistic widths): looser tolerance.
    prepared_bf16 = prepare_generator_params(res_params, final_params,
                                             INPUT_DIM, DIMS, DATA_DIM,
                                             matmul_dtype=jnp.bfloat16)
    out_bf16 = jax.block_until_ready(generator_forward(x, prepared_bf16))
    assert out_bf16.shape == (B, DATA_DIM), out_bf16.shape
    assert jnp.allclose(out_bf16, ref, atol=1e-1, rtol=1e-1), \
        float(jnp.max(jnp.abs(out_bf16 - ref)))

    print("KERNEL_OK")
</pallas_src>

<mosaic_0001>
module attributes {stable_mosaic.version = 11 : i64} {
  func.func @kernel(%arg0: memref<8x128xf32, #tpu.memory_space<vmem>>, %arg1: memref<128x128xf32, #tpu.memory_space<vmem>>, %arg2: memref<1x128xf32, #tpu.memory_space<vmem>>, %arg3: memref<1x128xf32, #tpu.memory_space<vmem>>, %arg4: memref<256x128xf32, #tpu.memory_space<vmem>>, %arg5: memref<1x128xf32, #tpu.memory_space<vmem>>, %arg6: memref<1x128xf32, #tpu.memory_space<vmem>>, %arg7: memref<384x128xf32, #tpu.memory_space<vmem>>, %arg8: memref<1x128xf32, #tpu.memory_space<vmem>>, %arg9: memref<8x128xf32, #tpu.memory_space<vmem>>) attributes {dimension_semantics = [], scalar_prefetch = 0 : i64, scratch_operands = 0 : i64, tpu.core_type = #tpu.core_type<tc>} {
    %c0 = arith.constant 0 : index
    %c0_0 = arith.constant 0 : index
    %0 = vector.load %arg0[%c0, %c0_0] : memref<8x128xf32, #tpu.memory_space<vmem>>, vector<8x128xf32>
    %c0_1 = arith.constant 0 : index
    %c0_2 = arith.constant 0 : index
    %1 = vector.load %arg1[%c0_1, %c0_2] : memref<128x128xf32, #tpu.memory_space<vmem>>, vector<128x128xf32>
    %cst = arith.constant dense<0.000000e+00> : vector<8x128xf32>
    %2 = tpu.matmul %0, %1, %cst {dimension_numbers = #tpu.dot_dimension_numbers<[1], [0], [0], [1], [0, 0, 1, 1], [], []>} : vector<8x128xf32>, vector<128x128xf32>, vector<8x128xf32> -> vector<8x128xf32>
    %cst_3 = arith.constant dense<0.000000e+00> : vector<128xf32>
    %3 = vector.multi_reduction <add>, %2, %cst_3 [0] : vector<8x128xf32> to vector<128xf32>
    %4 = vector.shape_cast %3 : vector<128xf32> to vector<1x128xf32>
    %5 = arith.mulf %2, %2 : vector<8x128xf32>
    %cst_4 = arith.constant dense<0.000000e+00> : vector<128xf32>
    %6 = vector.multi_reduction <add>, %5, %cst_4 [0] : vector<8x128xf32> to vector<128xf32>
    %7 = vector.shape_cast %6 : vector<128xf32> to vector<1x128xf32>
    %cst_5 = arith.constant 1.250000e-01 : f32
    %8 = vector.broadcast %cst_5 : f32 to vector<1x128xf32>
    %9 = arith.mulf %4, %8 : vector<1x128xf32>
    %cst_6 = arith.constant 1.250000e-01 : f32
    %10 = vector.broadcast %cst_6 : f32 to vector<1x128xf32>
    %11 = arith.mulf %7, %10 : vector<1x128xf32>
    %12 = arith.mulf %9, %9 : vector<1x128xf32>
    %13 = arith.subf %11, %12 : vector<1x128xf32>
    %cst_7 = arith.constant 0.000000e+00 : f32
    %14 = vector.broadcast %cst_7 : f32 to vector<1x128xf32>
    %15 = arith.maximumf %13, %14 : vector<1x128xf32>
    %c0_8 = arith.constant 0 : index
    %c0_9 = arith.constant 0 : index
    %16 = vector.load %arg2[%c0_8, %c0_9] : memref<1x128xf32, #tpu.memory_space<vmem>>, vector<1x128xf32>
    %cst_10 = arith.constant 9.99999974E-6 : f32
    %17 = vector.broadcast %cst_10 : f32 to vector<1x128xf32>
    %18 = arith.addf %15, %17 : vector<1x128xf32>
    %19 = math.rsqrt %18 : vector<1x128xf32>
    %20 = arith.mulf %16, %19 : vector<1x128xf32>
    %c0_11 = arith.constant 0 : index
    %c0_12 = arith.constant 0 : index
    %21 = vector.load %arg3[%c0_11, %c0_12] : memref<1x128xf32, #tpu.memory_space<vmem>>, vector<1x128xf32>
    %22 = arith.mulf %9, %20 : vector<1x128xf32>
    %23 = arith.subf %21, %22 : vector<1x128xf32>
    %24 = vector.broadcast %20 : vector<1x128xf32> to vector<8x128xf32>
    %25 = arith.mulf %2, %24 : vector<8x128xf32>
    %26 = vector.broadcast %23 : vector<1x128xf32> to vector<8x128xf32>
    %27 = arith.addf %25, %26 : vector<8x128xf32>
    %cst_13 = arith.constant 0.000000e+00 : f32
    %28 = vector.broadcast %cst_13 : f32 to vector<8x128xf32>
    %29 = arith.maximumf %27, %28 : vector<8x128xf32>
    %c0_14 = arith.constant 0 : index
    %c0_15 = arith.constant 0 : index
    %30 = vector.load %arg4[%c0_14, %c0_15] : memref<256x128xf32, #tpu.memory_space<vmem>>, vector<128x128xf32>
    %cst_16 = arith.constant dense<0.000000e+00> : vector<8x128xf32>
    %31 = tpu.matmul %0, %30, %cst_16 {dimension_numbers = #tpu.dot_dimension_numbers<[1], [0], [0], [1], [0, 0, 1, 1], [], []>} : vector<8x128xf32>, vector<128x128xf32>, vector<8x128xf32> -> vector<8x128xf32>
    %c128 = arith.constant 128 : index
    %c0_17 = arith.constant 0 : index
    %32 = vector.load %arg4[%c128, %c0_17] : memref<256x128xf32, #tpu.memory_space<vmem>>, vector<128x128xf32>
    %cst_18 = arith.constant dense<0.000000e+00> : vector<8x128xf32>
    %33 = tpu.matmul %29, %32, %cst_18 {dimension_numbers = #tpu.dot_dimension_numbers<[1], [0], [0], [1], [0, 0, 1, 1], [], []>} : vector<8x128xf32>, vector<128x128xf32>, vector<8x128xf32> -> vector<8x128xf32>
    %34 = arith.addf %31, %33 : vector<8x128xf32>
    %cst_19 = arith.constant dense<0.000000e+00> : vector<128xf32>
    %35 = vector.multi_reduction <add>, %34, %cst_19 [0] : vector<8x128xf32> to vector<128xf32>
    %36 = vector.shape_cast %35 : vector<128xf32> to vector<1x128xf32>
    %37 = arith.mulf %34, %34 : vector<8x128xf32>
    %cst_20 = arith.constant dense<0.000000e+00> : vector<128xf32>
    %38 = vector.multi_reduction <add>, %37, %cst_20 [0] : vector<8x128xf32> to vector<128xf32>
    %39 = vector.shape_cast %38 : vector<128xf32> to vector<1x128xf32>
    %cst_21 = arith.constant 1.250000e-01 : f32
    %40 = vector.broadcast %cst_21 : f32 to vector<1x128xf32>
    %41 = arith.mulf %36, %40 : vector<1x128xf32>
    %cst_22 = arith.constant 1.250000e-01 : f32
    %42 = vector.broadcast %cst_22 : f32 to vector<1x128xf32>
    %43 = arith.mulf %39, %42 : vector<1x128xf32>
    %44 = arith.mulf %41, %41 : vector<1x128xf32>
    %45 = arith.subf %43, %44 : vector<1x128xf32>
    %cst_23 = arith.constant 0.000000e+00 : f32
    %46 = vector.broadcast %cst_23 : f32 to vector<1x128xf32>
    %47 = arith.maximumf %45, %46 : vector<1x128xf32>
    %c0_24 = arith.constant 0 : index
    %c0_25 = arith.constant 0 : index
    %48 = vector.load %arg5[%c0_24, %c0_25] : memref<1x128xf32, #tpu.memory_space<vmem>>, vector<1x128xf32>
    %cst_26 = arith.constant 9.99999974E-6 : f32
    %49 = vector.broadcast %cst_26 : f32 to vector<1x128xf32>
    %50 = arith.addf %47, %49 : vector<1x128xf32>
    %51 = math.rsqrt %50 : vector<1x128xf32>
    %52 = arith.mulf %48, %51 : vector<1x128xf32>
    %c0_27 = arith.constant 0 : index
    %c0_28 = arith.constant 0 : index
    %53 = vector.load %arg6[%c0_27, %c0_28] : memref<1x128xf32, #tpu.memory_space<vmem>>, vector<1x128xf32>
    %54 = arith.mulf %41, %52 : vector<1x128xf32>
    %55 = arith.subf %53, %54 : vector<1x128xf32>
    %56 = vector.broadcast %52 : vector<1x128xf32> to vector<8x128xf32>
    %57 = arith.mulf %34, %56 : vector<8x128xf32>
    %58 = vector.broadcast %55 : vector<1x128xf32> to vector<8x128xf32>
    %59 = arith.addf %57, %58 : vector<8x128xf32>
    %cst_29 = arith.constant 0.000000e+00 : f32
    %60 = vector.broadcast %cst_29 : f32 to vector<8x128xf32>
    %61 = arith.maximumf %59, %60 : vector<8x128xf32>
    %c0_30 = arith.constant 0 : index
    %c0_31 = arith.constant 0 : index
    %62 = vector.load %arg7[%c0_30, %c0_31] : memref<384x128xf32, #tpu.memory_space<vmem>>, vector<128x128xf32>
    %cst_32 = arith.constant dense<0.000000e+00> : vector<8x128xf32>
    %63 = tpu.matmul %0, %62, %cst_32 {dimension_numbers = #tpu.dot_dimension_numbers<[1], [0], [0], [1], [0, 0, 1, 1], [], []>} : vector<8x128xf32>, vector<128x128xf32>, vector<8x128xf32> -> vector<8x128xf32>
    %c128_33 = arith.constant 128 : index
    %c0_34 = arith.constant 0 : index
    %64 = vector.load %arg7[%c128_33, %c0_34] : memref<384x128xf32, #tpu.memory_space<vmem>>, vector<128x128xf32>
    %cst_35 = arith.constant dense<0.000000e+00> : vector<8x128xf32>
    %65 = tpu.matmul %29, %64, %cst_35 {dimension_numbers = #tpu.dot_dimension_numbers<[1], [0], [0], [1], [0, 0, 1, 1], [], []>} : vector<8x128xf32>, vector<128x128xf32>, vector<8x128xf32> -> vector<8x128xf32>
    %66 = arith.addf %63, %65 : vector<8x128xf32>
    %c256 = arith.constant 256 : index
    %c0_36 = arith.constant 0 : index
    %67 = vector.load %arg7[%c256, %c0_36] : memref<384x128xf32, #tpu.memory_space<vmem>>, vector<128x128xf32>
    %cst_37 = arith.constant dense<0.000000e+00> : vector<8x128xf32>
    %68 = tpu.matmul %61, %67, %cst_37 {dimension_numbers = #tpu.dot_dimension_numbers<[1], [0], [0], [1], [0, 0, 1, 1], [], []>} : vector<8x128xf32>, vector<128x128xf32>, vector<8x128xf32> -> vector<8x128xf32>
    %69 = arith.addf %66, %68 : vector<8x128xf32>
    %c0_38 = arith.constant 0 : index
    %c0_39 = arith.constant 0 : index
    %70 = vector.load %arg8[%c0_38, %c0_39] : memref<1x128xf32, #tpu.memory_space<vmem>>, vector<1x128xf32>
    %71 = vector.broadcast %70 : vector<1x128xf32> to vector<8x128xf32>
    %72 = arith.addf %69, %71 : vector<8x128xf32>
    %c0_40 = arith.constant 0 : index
    %c0_41 = arith.constant 0 : index
    %73 = vector.load %arg9[%c0_40, %c0_41] : memref<8x128xf32, #tpu.memory_space<vmem>>, vector<8x128xf32>
    tpu.vector_store %arg9[%c0_40, %c0_41], %72 {strides = array<i32>} : memref<8x128xf32, #tpu.memory_space<vmem>>, vector<8x128xf32>,
    return
  }
}

</mosaic_0001>

<bundles_post_ra>
// kernel: tpu_custom_call.1
= control target key start
LH: loop header
LB: loop body
LE: loop exit
PB: predicated region body
PF: predicated region fallthrough
CT: control target
= control target key end

     0   :  { %14 = vsyncpa [#allocation3], 0  ;;  %s1364_s0 = inlined_call_operand.hbm [shape: f32[8,128], index: 0, kind: input, shape index: {}]   ;;  %s1365_s1 = inlined_call_operand.hbm [shape: f32[128,128], index: 1, kind: input, shape index: {}]   ;;  %s1366_s2 = inlined_call_operand.vmem [shape: f32[1,128], index: 2, kind: input, shape index: {}]   ;;  %s1367_s3 = inlined_call_operand.vmem [shape: f32[1,128], index: 3, kind: input, shape index: {}]   ;;  %s1368_s4 = inlined_call_operand.hbm [shape: f32[256,128], index: 4, kind: input, shape index: {}]   ;;  %s1369_s5 = inlined_call_operand.vmem [shape: f32[1,128], index: 5, kind: input, shape index: {}]   ;;  %s1370_s6 = inlined_call_operand.vmem [shape: f32[1,128], index: 6, kind: input, shape index: {}]   ;;  %s1371_s7 = inlined_call_operand.hbm [shape: f32[384,128], index: 7, kind: input, shape index: {}]   ;;  %s1372_s8 = inlined_call_operand.vmem [shape: f32[1,128], index: 8, kind: input, shape index: {}]   ;;  %s1373_s9 = inlined_call_operand.hbm [shape: f32[8,128], index: 9, kind: output, shape index: {}]  }
   0x1   :  { %15 = vsyncpa [#allocation6], 0 }
   0x2   :  { %16 = vsyncpa [#allocation9], 0 }
   0x3   :  { %17 = vsyncpa [#allocation4], 0  ;;  %s1144_s30 = smov [#allocation5]  }
   0x4   :  { %s33_s10 = sshll.u32 %s1144_s30, 4  ;;  %s34_s10 = int_to_ptr.vmem [resolvable:$true] %s33_s10 }
   0x5   :  { %s1044_s11 = scalar_lea.vmem %s34_s10, 2048  ;;  %p1049_p1 = scmp.lt.s32.totalorder %s34_s10, %s34_s10 }
   0x6   :  { %p1045_p0 = scmp.ne.s32.totalorder %s34_s10, %s1044_s11  ;;  %p1050_p2 = scmp.lt.s32.totalorder %s1044_s11, %s1044_s11 }
   0x8   :  { %p1051_p3 = por %p1050_p2, %p1049_p1 }
   0xa   :  { %p1052_p4 = pnand %p1051_p3, %p1045_p0 }
   0xc   :  { %1055 = shalt.err (!%p1052_p4)
}
   0xd   :  { %s1145_s12 = smov 128   ;;  %s1146_s13 = smov 8  }
   0xe   :  { %39 = dma.hbm_to_vmem [thread:$0]  %s1365_s1, 2048, %s34_s10, [#allocation6], %s1145_s12, %s1145_s12, %s1146_s13  }
   0xf   :  { %s1147_s16 = smov [#allocation2]   ;;  %s1148_s18 = smov [#allocation7]  }
  0x10   :  { %s24_s17 = sshll.u32 %s1147_s16, 4  ;;  %s49_s19 = sshll.u32 %s1148_s18, 4  ;;  %s25_s17 = int_to_ptr.vmem [resolvable:$true] %s24_s17  ;;  %s50_s19 = int_to_ptr.vmem [resolvable:$true] %s49_s19 }
  0x11   :  { %s1064_s20 = scalar_lea.vmem %s25_s17, 128  ;;  %p1069_p6 = scmp.lt.s32.totalorder %s25_s17, %s25_s17 }
  0x12   :  { %p1065_p5 = scmp.ne.s32.totalorder %s25_s17, %s1064_s20  ;;  %p1070_p7 = scmp.lt.s32.totalorder %s1064_s20, %s1064_s20 }
  0x14   :  { %p1071_p8 = por %p1070_p7, %p1069_p6 }
  0x16   :  { %p1072_p9 = pnand %p1071_p8, %p1065_p5 }
  0x18   :  { %1075 = shalt.err (!%p1072_p9)
}
  0x19   :  { %27 = dma.hbm_to_vmem [thread:$0]  %s1364_s0, 128, %s25_s17, [#allocation3]  }
  0x1a   :  { %s1084_s23 = scalar_lea.vmem %s50_s19, 4096  ;;  %p1089_p11 = scmp.lt.s32.totalorder %s50_s19, %s50_s19 }
  0x1b   :  { %p1085_p10 = scmp.ne.s32.totalorder %s50_s19, %s1084_s23  ;;  %p1090_p12 = scmp.lt.s32.totalorder %s1084_s23, %s1084_s23 }
  0x1d   :  { %p1091_p13 = por %p1090_p12, %p1089_p11 }
  0x1f   :  { %p1092_p0 = pnand %p1091_p13, %p1085_p10 }
  0x21   :  { %1095 = shalt.err (!%p1092_p0)
}
  0x22   :  { %55 = dma.hbm_to_vmem [thread:$0]  %s1368_s4, 4096, %s50_s19, [#allocation6], %s1145_s12, %s1145_s12, %s1146_s13  }
  0x23   :  { %s1149_s25 = smov [#allocation8]  }
  0x24   :  { %s65_s26 = sshll.u32 %s1149_s25, 4  ;;  %s66_s26 = int_to_ptr.vmem [resolvable:$true] %s65_s26 }
  0x25   :  { %s1104_s27 = scalar_lea.vmem %s66_s26, 6144  ;;  %p1109_p2 = scmp.lt.s32.totalorder %s66_s26, %s66_s26 }
  0x26   :  { %p1105_p1 = scmp.ne.s32.totalorder %s66_s26, %s1104_s27  ;;  %p1110_p3 = scmp.lt.s32.totalorder %s1104_s27, %s1104_s27 }
  0x28   :  { %p1111_p4 = por %p1110_p3, %p1109_p2 }
  0x2a   :  { %p1112_p5 = pnand %p1111_p4, %p1105_p1 }
  0x2c   :  { %1115 = shalt.err (!%p1112_p5)
}
  0x2d   :  { %71 = dma.hbm_to_vmem [thread:$0]  %s1371_s7, 6144, %s66_s26, [#allocation9], %s1145_s12, %s1145_s12, %s1146_s13  }
  0x2e   :  { %1136 = dma.done.wait [#allocation3], 128  }
  0x2f   :  { %1137 = vsyncadd [#allocation3], 4294967168 }
  0x30   :  { %1138 = dma.done.wait [#allocation6], 6144  }
  0x31   :  { %1139 = vsyncadd [#allocation6], 4294961152 }
  0x32   :  { %1140 = dma.done.wait [#allocation9], 6144  }
  0x33   :  { %1141 = vsyncadd [#allocation9], 4294961152  ;;  %v1150_v0 = vmov 0.0   ;;  %vm1151_vm0 = vmmov 0   ;;  %v102_v1 = vld [vmem:[#allocation5 + $0x78] sm:$0xff]  ;;  %v101_v2 = vld [vmem:[#allocation5 + $0x70] sm:$0xff] }
  0x34   :  { %813 = vmatprep.subr.mxu0 %v1150_v0  ;;  %845 = vmatprep.mubr.msk.f32.mxu0 %vm1151_vm0, %v1150_v0  ;;  %v100_v3 = vld [vmem:[#allocation5 + $0x68] sm:$0xff]  ;;  %v99_v4 = vld [vmem:[#allocation5 + $0x60] sm:$0xff]  ;;  %v98_v5 = vld [vmem:[#allocation5 + $0x58] sm:$0xff]  ;;  %s1152_s13 = smov [#allocation10]  }
  0x35   :  { %848 = vmatprep.subr.mxu1 %v1150_v0  ;;  %880 = vmatprep.mubr.msk.f32.mxu1 %vm1151_vm0, %v1150_v0  ;;  %v97_v6 = vld [vmem:[#allocation5 + $0x50] sm:$0xff]  ;;  %v96_v7 = vld [vmem:[#allocation5 + $0x48] sm:$0xff]  ;;  %v95_v8 = vld [vmem:[#allocation5 + $0x40] sm:$0xff]  ;;  %s699_s14 = sshll.u32 %s1152_s13, 4  ;;  %s700_s14 = int_to_ptr.vmem [resolvable:$true] %s699_s14 }
  0x36   :  { %814 = vmatpush3.msra.mxu0 %v102_v1  ;;  %v94_v9 = vld [vmem:[#allocation5 + $0x38] sm:$0xff]  ;;  %v93_v10 = vld [vmem:[#allocation5 + $0x30] sm:$0xff]  ;;  %v92_v11 = vld [vmem:[#allocation5 + $0x28] sm:$0xff]  ;;  %p1121_p7 = scmp.lt.s32.totalorder %s700_s14, %s700_s14 }
  0x37   :  { %815 = vmatprep.subr.mxu0 %v1150_v0  ;;  %v91_v12 = vld [vmem:[#allocation5 + $0x20] sm:$0xff]  ;;  %v90_v13 = vld [vmem:[#allocation5 + $0x18] sm:$0xff]  ;;  %v89_v14 = vld [vmem:[#allocation5 + $0x10] sm:$0xff] }
  0x38   :  { %816 = vmatpush3.msra.mxu0 %v101_v2  ;;  %v88_v15 = vld [vmem:[#allocation5 + $0x8] sm:$0xff]  ;;  %v87_v16 = vld [vmem:[#allocation5] sm:$0xff]  ;;  %v1244_v17 = vld [vmem:[#allocation2] sm:$0xff] }
  0x39   :  { %817 = vmatprep.subr.mxu0 %v1150_v0  ;;  %v228_v18 = vld [vmem:[#allocation7 + $0x78] sm:$0xff]  ;;  %v227_v20 = vld [vmem:[#allocation7 + $0x70] sm:$0xff]  ;;  %v226_v22 = vld [vmem:[#allocation7 + $0x68] sm:$0xff] }
  0x3a   :  { %818 = vmatpush3.msra.mxu0 %v100_v3  ;;  %v244_v19 = vld [vmem:[#allocation7 + $0xf8] sm:$0xff]  ;;  %v243_v21 = vld [vmem:[#allocation7 + $0xf0] sm:$0xff]  ;;  %v242_v23 = vld [vmem:[#allocation7 + $0xe8] sm:$0xff] }
  0x3b   :  { %819 = vmatprep.subr.mxu0 %v1150_v0  ;;  %849 = vmatpush3.msra.mxu1 %v244_v19  ;;  %v225_v24 = vld [vmem:[#allocation7 + $0x60] sm:$0xff]  ;;  %v224_v26 = vld [vmem:[#allocation7 + $0x58] sm:$0xff]  ;;  %v223_v28 = vld [vmem:[#allocation7 + $0x50] sm:$0xff] }
  0x3c   :  { %820 = vmatpush3.msra.mxu0 %v99_v4  ;;  %850 = vmatprep.subr.mxu1 %v1150_v0  ;;  %v241_v25 = vld [vmem:[#allocation7 + $0xe0] sm:$0xff]  ;;  %v240_v27 = vld [vmem:[#allocation7 + $0xd8] sm:$0xff]  ;;  %v239_v29 = vld [vmem:[#allocation7 + $0xd0] sm:$0xff] }
  0x3d   :  { %821 = vmatprep.subr.mxu0 %v1150_v0  ;;  %851 = vmatpush3.msra.mxu1 %v243_v21  ;;  %v222_v30 = vld [vmem:[#allocation7 + $0x48] sm:$0xff]  ;;  %v221_v32 = vld [vmem:[#allocation7 + $0x40] sm:$0xff]  ;;  %v220_v34 = vld [vmem:[#allocation7 + $0x38] sm:$0xff] }
  0x3e   :  { %822 = vmatpush3.msra.mxu0 %v98_v5  ;;  %852 = vmatprep.subr.mxu1 %v1150_v0  ;;  %v238_v31 = vld [vmem:[#allocation7 + $0xc8] sm:$0xff]  ;;  %v237_v33 = vld [vmem:[#allocation7 + $0xc0] sm:$0xff]  ;;  %v236_v35 = vld [vmem:[#allocation7 + $0xb8] sm:$0xff] }
  0x3f   :  { %823 = vmatprep.subr.mxu0 %v1150_v0  ;;  %853 = vmatpush3.msra.mxu1 %v242_v23  ;;  %v219_v36 = vld [vmem:[#allocation7 + $0x30] sm:$0xff]  ;;  %v218_v38 = vld [vmem:[#allocation7 + $0x28] sm:$0xff]  ;;  %v217_v40 = vld [vmem:[#allocation7 + $0x20] sm:$0xff] }
  0x40   :  { %824 = vmatpush3.msra.mxu0 %v97_v6  ;;  %854 = vmatprep.subr.mxu1 %v1150_v0  ;;  %v235_v37 = vld [vmem:[#allocation7 + $0xb0] sm:$0xff]  ;;  %v234_v39 = vld [vmem:[#allocation7 + $0xa8] sm:$0xff]  ;;  %v233_v41 = vld [vmem:[#allocation7 + $0xa0] sm:$0xff] }
  0x41   :  { %825 = vmatprep.subr.mxu0 %v1150_v0  ;;  %855 = vmatpush3.msra.mxu1 %v241_v25  ;;  %v216_v42 = vld [vmem:[#allocation7 + $0x18] sm:$0xff]  ;;  %v215_v44 = vld [vmem:[#allocation7 + $0x10] sm:$0xff]  ;;  %v214_v46 = vld [vmem:[#allocation7 + $0x8] sm:$0xff] }
  0x42   :  { %826 = vmatpush3.msra.mxu0 %v96_v7  ;;  %856 = vmatprep.subr.mxu1 %v1150_v0  ;;  %v232_v43 = vld [vmem:[#allocation7 + $0x98] sm:$0xff]  ;;  %v231_v45 = vld [vmem:[#allocation7 + $0x90] sm:$0xff]  ;;  %v230_v47 = vld [vmem:[#allocation7 + $0x88] sm:$0xff] }
  0x43   :  { %827 = vmatprep.subr.mxu0 %v1150_v0  ;;  %857 = vmatpush3.msra.mxu1 %v240_v27  ;;  %v213_v48 = vld [vmem:[#allocation7] sm:$0xff]  ;;  %v440_v50 = vld [vmem:[#allocation8 + $0x78] sm:$0xff]  ;;  %v439_v51 = vld [vmem:[#allocation8 + $0x70] sm:$0xff] }
  0x44   :  { %828 = vmatpush3.msra.mxu0 %v95_v8  ;;  %858 = vmatprep.subr.mxu1 %v1150_v0  ;;  %v229_v49 = vld [vmem:[#allocation7 + $0x80] sm:$0xff]  ;;  %v438_v52 = vld [vmem:[#allocation8 + $0x68] sm:$0xff]  ;;  %v436_v54 = vld [vmem:[#allocation8 + $0x58] sm:$0xff] }
  0x45   :  { %829 = vmatprep.subr.mxu0 %v1150_v0  ;;  %859 = vmatpush3.msra.mxu1 %v239_v29  ;;  %v437_v53 = vld [vmem:[#allocation8 + $0x60] sm:$0xff]  ;;  %v435_v55 = vld [vmem:[#allocation8 + $0x50] sm:$0xff]  ;;  %v434_v56 = vld [vmem:[#allocation8 + $0x48] sm:$0xff] }
  0x46   :  { %830 = vmatpush3.msra.mxu0 %v94_v9  ;;  %860 = vmatprep.subr.mxu1 %v1150_v0  ;;  %v433_v57 = vld [vmem:[#allocation8 + $0x40] sm:$0xff]  ;;  %v432_v58 = vld [vmem:[#allocation8 + $0x38] sm:$0xff]  ;;  %v431_v59 = vld [vmem:[#allocation8 + $0x30] sm:$0xff] }
  0x47   :  { %831 = vmatprep.subr.mxu0 %v1150_v0  ;;  %861 = vmatpush3.msra.mxu1 %v238_v31  ;;  %v430_v60 = vld [vmem:[#allocation8 + $0x28] sm:$0xff]  ;;  %v429_v61 = vld [vmem:[#allocation8 + $0x20] sm:$0xff]  ;;  %v428_v62 = vld [vmem:[#allocation8 + $0x18] sm:$0xff] }
  0x48   :  { %832 = vmatpush3.msra.mxu0 %v93_v10  ;;  %862 = vmatprep.subr.mxu1 %v1150_v0  ;;  %v427_v63 = vld [vmem:[#allocation8 + $0x10] sm:$0xff]  ;;  %v426_v1 = vld [vmem:[#allocation8 + $0x8] sm:$0xff]  ;;  %v425_v2 = vld [vmem:[#allocation8] sm:$0xff] }
  0x49   :  { %833 = vmatprep.subr.mxu0 %v1150_v0  ;;  %863 = vmatpush3.msra.mxu1 %v237_v33 }
  0x4a   :  { %834 = vmatpush3.msra.mxu0 %v92_v11  ;;  %864 = vmatprep.subr.mxu1 %v1150_v0 }
  0x4b   :  { %835 = vmatprep.subr.mxu0 %v1150_v0  ;;  %865 = vmatpush3.msra.mxu1 %v236_v35 }
  0x4c   :  { %836 = vmatpush3.msra.mxu0 %v91_v12  ;;  %866 = vmatprep.subr.mxu1 %v1150_v0 }
  0x4d   :  { %837 = vmatprep.subr.mxu0 %v1150_v0  ;;  %867 = vmatpush3.msra.mxu1 %v235_v37 }
  0x4e   :  { %838 = vmatpush3.msra.mxu0 %v90_v13  ;;  %868 = vmatprep.subr.mxu1 %v1150_v0 }
  0x4f   :  { %839 = vmatprep.subr.mxu0 %v1150_v0  ;;  %869 = vmatpush3.msra.mxu1 %v234_v39  ;;  %v455_v39 = vld [vmem:[#allocation8 + $0xf0] sm:$0xff] }
  0x50   :  { %840 = vmatpush3.msra.mxu0 %v89_v14  ;;  %870 = vmatprep.subr.mxu1 %v1150_v0 }
  0x51   :  { %841 = vmatprep.subr.mxu0 %v1150_v0  ;;  %871 = vmatpush3.msra.mxu1 %v233_v41  ;;  %v453_v41 = vld [vmem:[#allocation8 + $0xe0] sm:$0xff] }
  0x52   :  { %842 = vmatpush3.msra.mxu0 %v88_v15  ;;  %872 = vmatprep.subr.mxu1 %v1150_v0 }
  0x53   :  { %843 = vmatprep.subr.mxu0 %v1150_v0  ;;  %873 = vmatpush3.msra.mxu1 %v232_v43  ;;  %v451_v43 = vld [vmem:[#allocation8 + $0xd0] sm:$0xff] }
  0x54   :  { %844 = vmatpush3.msra.mxu0 %v87_v16  ;;  %874 = vmatprep.subr.mxu1 %v1150_v0 }
  0x55   :  { %846 = vmatmul.mubr.f32.vlgmr.msra.gmra.mxu0 %v1244_v17  ;;  %883 = vmatprep.subr.mxu0 %v1150_v0 }
  0x56   :  { %915 = vmatprep.mubr.msk.f32.mxu0 %vm1151_vm0, %v1150_v0  ;;  %884 = vmatpush3.msra.mxu0 %v228_v18 }
  0x57   :  { %885 = vmatprep.subr.mxu0 %v1150_v0  ;;  %875 = vmatpush3.msra.mxu1 %v231_v45  ;;  %v449_v45 = vld [vmem:[#allocation8 + $0xc0] sm:$0xff] }
  0x58   :  { %886 = vmatpush3.msra.mxu0 %v227_v20  ;;  %876 = vmatprep.subr.mxu1 %v1150_v0 }
  0x59   :  { %887 = vmatprep.subr.mxu0 %v1150_v0  ;;  %877 = vmatpush3.msra.mxu1 %v230_v47  ;;  %v447_v47 = vld [vmem:[#allocation8 + $0xb0] sm:$0xff] }
  0x5a   :  { %888 = vmatpush3.msra.mxu0 %v226_v22  ;;  %878 = vmatprep.subr.mxu1 %v1150_v0 }
  0x5b   :  { %889 = vmatprep.subr.mxu0 %v1150_v0  ;;  %879 = vmatpush3.msra.mxu1 %v229_v49  ;;  %v445_v49 = vld [vmem:[#allocation8 + $0xa0] sm:$0xff] }
  0x5c   :  { %890 = vmatpush3.msra.mxu0 %v225_v24  ;;  %918 = vmatprep.subr.mxu1 %v1150_v0  ;;  %v199_v24 = vlaneseq }
  0x5d   :  { %891 = vmatprep.subr.mxu0 %v1150_v0 }
  0x5e   :  { %892 = vmatpush3.msra.mxu0 %v224_v26  ;;  %v200_v25 = vshrl.u32 %v199_v24, 7  ;;  %v191_v26 = vld [vmem:[%s1366_s2] sm:$0x1] }
  0x5f   :  { %893 = vmatprep.subr.mxu0 %v1150_v0 }
  0x60   :  { %894 = vmatpush3.msra.mxu0 %v223_v28  ;;  %v1305_v27 = vsub.s32 0, %v200_v25 }
  0x61   :  { %895 = vmatprep.subr.mxu0 %v1150_v0 }
  0x62   :  { %896 = vmatpush3.msra.mxu0 %v222_v30  ;;  %v195_v30 = vld [vmem:[%s1367_s3] sm:$0x1] }
  0x63   :  { %897 = vmatprep.subr.mxu0 %v1150_v0 }
  0x64   :  { %898 = vmatpush3.msra.mxu0 %v221_v32 }
  0x65   :  { %899 = vmatprep.subr.mxu0 %v1150_v0 }
  0x66   :  { %900 = vmatpush3.msra.mxu0 %v220_v34 }
  0x67   :  { %901 = vmatprep.subr.mxu0 %v1150_v0 }
  0x68   :  { %902 = vmatpush3.msra.mxu0 %v219_v36 }
  0x69   :  { %903 = vmatprep.subr.mxu0 %v1150_v0 }
  0x6a   :  { %904 = vmatpush3.msra.mxu0 %v218_v38  ;;  %v456_v38 = vld [vmem:[#allocation8 + $0xf8] sm:$0xff] }
  0x6b   :  { %905 = vmatprep.subr.mxu0 %v1150_v0 }
  0x6c   :  { %906 = vmatpush3.msra.mxu0 %v217_v40  ;;  %v454_v40 = vld [vmem:[#allocation8 + $0xe8] sm:$0xff] }
  0x6d   :  { %907 = vmatprep.subr.mxu0 %v1150_v0 }
  0x6e   :  { %908 = vmatpush3.msra.mxu0 %v216_v42  ;;  %v452_v42 = vld [vmem:[#allocation8 + $0xd8] sm:$0xff] }
  0x6f   :  { %909 = vmatprep.subr.mxu0 %v1150_v0 }
  0x70   :  { %910 = vmatpush3.msra.mxu0 %v215_v44  ;;  %v450_v44 = vld [vmem:[#allocation8 + $0xc8] sm:$0xff] }
  0x71   :  { %911 = vmatprep.subr.mxu0 %v1150_v0 }
  0x72   :  { %912 = vmatpush3.msra.mxu0 %v214_v46  ;;  %v448_v46 = vld [vmem:[#allocation8 + $0xb8] sm:$0xff] }
  0x73   :  { %913 = vmatprep.subr.mxu0 %v1150_v0 }
  0x74   :  { %914 = vmatpush3.msra.mxu0 %v213_v48  ;;  %v446_v48 = vld [vmem:[#allocation8 + $0xa8] sm:$0xff] }
  0x75   :  { %916 = vmatmul.mubr.f32.vlgmr.msra.gmra.mxu0 %v1244_v17  ;;  %953 = vmatprep.subr.mxu0 %v1150_v0 }
  0x76   :  { %985 = vmatprep.mubr.msk.f32.mxu0 %vm1151_vm0, %v1150_v0  ;;  %954 = vmatpush3.msra.mxu0 %v440_v50  ;;  %v444_v50 = vld [vmem:[#allocation8 + $0x98] sm:$0xff] }
  0x77   :  { %955 = vmatprep.subr.mxu0 %v1150_v0 }
  0x78   :  { %956 = vmatpush3.msra.mxu0 %v439_v51  ;;  %v443_v51 = vld [vmem:[#allocation8 + $0x90] sm:$0xff] }
  0x79   :  { %957 = vmatprep.subr.mxu0 %v1150_v0 }
  0x7a   :  { %958 = vmatpush3.msra.mxu0 %v438_v52  ;;  %v442_v52 = vld [vmem:[#allocation8 + $0x88] sm:$0xff] }
  0x7b   :  { %959 = vmatprep.subr.mxu0 %v1150_v0 }
  0x7c   :  { %960 = vmatpush3.msra.mxu0 %v437_v53  ;;  %v441_v53 = vld [vmem:[#allocation8 + $0x80] sm:$0xff] }
  0x7d   :  { %961 = vmatprep.subr.mxu0 %v1150_v0 }
  0x7e   :  { %962 = vmatpush3.msra.mxu0 %v436_v54 }
  0x7f   :  { %963 = vmatprep.subr.mxu0 %v1150_v0 }
  0x80   :  { %964 = vmatpush3.msra.mxu0 %v435_v55 }
  0x81   :  { %965 = vmatprep.subr.mxu0 %v1150_v0 }
  0x82   :  { %966 = vmatpush3.msra.mxu0 %v434_v56  ;;  %v612_v56 = vld [vmem:[#allocation8 + $0x178] sm:$0xff] }
  0x83   :  { %967 = vmatprep.subr.mxu0 %v1150_v0 }
  0x84   :  { %968 = vmatpush3.msra.mxu0 %v433_v57  ;;  %v611_v57 = vld [vmem:[#allocation8 + $0x170] sm:$0xff] }
  0x85   :  { %969 = vmatprep.subr.mxu0 %v1150_v0 }
  0x86   :  { %970 = vmatpush3.msra.mxu0 %v432_v58  ;;  %v610_v58 = vld [vmem:[#allocation8 + $0x168] sm:$0xff] }
  0x87   :  { %971 = vmatprep.subr.mxu0 %v1150_v0 }
  0x88   :  { %972 = vmatpush3.msra.mxu0 %v431_v59  ;;  %v609_v59 = vld [vmem:[#allocation8 + $0x160] sm:$0xff] }
  0x89   :  { %973 = vmatprep.subr.mxu0 %v1150_v0 }
  0x8a   :  { %974 = vmatpush3.msra.mxu0 %v430_v60  ;;  %v608_v60 = vld [vmem:[#allocation8 + $0x158] sm:$0xff] }
  0x8b   :  { %975 = vmatprep.subr.mxu0 %v1150_v0 }
  0x8c   :  { %976 = vmatpush3.msra.mxu0 %v429_v61  ;;  %v607_v61 = vld [vmem:[#allocation8 + $0x150] sm:$0xff] }
  0x8d   :  { %977 = vmatprep.subr.mxu0 %v1150_v0 }
  0x8e   :  { %978 = vmatpush3.msra.mxu0 %v428_v62 }
  0x8f   :  { %979 = vmatprep.subr.mxu0 %v1150_v0 }
  0x90   :  { %980 = vmatpush3.msra.mxu0 %v427_v63  ;;  %v606_v63 = vld [vmem:[#allocation8 + $0x148] sm:$0xff] }
  0x91   :  { %981 = vmatprep.subr.mxu0 %v1150_v0 }
  0x92   :  { %982 = vmatpush3.msra.mxu0 %v426_v1  ;;  %v605_v1 = vld [vmem:[#allocation8 + $0x140] sm:$0xff] }
  0x93   :  { %983 = vmatprep.subr.mxu0 %v1150_v0 }
  0x94   :  { %984 = vmatpush3.msra.mxu0 %v425_v2 }
  0x95   :  { %986 = vmatmul.mubr.f32.vlgmr.msra.gmra.mxu0 %v1244_v17 }
 0x115   :  { %v169_v3 = vpop.f32.mrf.mxu0 }
 0x116   :  { %v173_v4 = vrot.slane %v169_v3, 4  ;;  %v179_v5 = vmul.f32 %v169_v3, %v169_v3 }
 0x117   :  { %v847_v6 = vpop.f32.mrf.mxu0 }
 0x118   :  { %v174_v7 = vadd.f32 %v173_v4, %v169_v3  ;;  %v180_v8 = vrot.slane %v179_v5, 4  ;;  %v603_v4 = vld [vmem:[#allocation8 + $0x130] sm:$0xff]  ;;  %v601_v6 = vld [vmem:[#allocation8 + $0x120] sm:$0xff] }
 0x11a   :  { %v175_v9 = vrot.slane %v174_v7, 2  ;;  %v181_v10 = vadd.f32 %v180_v8, %v179_v5  ;;  %v602_v5 = vld [vmem:[#allocation8 + $0x128] sm:$0xff]  ;;  %v599_v8 = vld [vmem:[#allocation8 + $0x110] sm:$0xff] }
 0x11c   :  { %v176_v11 = vadd.f32 %v175_v9, %v174_v7  ;;  %v182_v12 = vrot.slane %v181_v10, 2  ;;  %v600_v7 = vld [vmem:[#allocation8 + $0x118] sm:$0xff]  ;;  %v598_v9 = vld [vmem:[#allocation8 + $0x108] sm:$0xff] }
 0x11e   :  { %v177_v13 = vrot.slane %v176_v11, 1  ;;  %v183_v14 = vadd.f32 %v182_v12, %v181_v10  ;;  %v597_v10 = vld [vmem:[#allocation8 + $0x100] sm:$0xff] }
 0x120   :  { %v178_v15 = vadd.f32 %v177_v13, %v176_v11  ;;  %v184_v16 = vrot.slane %v183_v14, 1 }
 0x122   :  { %v185_v18 = vadd.f32 %v184_v16, %v183_v14  ;;  %v186_v19 = vmul.f32 0.125, %v178_v15 }
 0x124   :  { %v187_v20 = vmul.f32 0.125, %v185_v18  ;;  %v188_v21 = vmul.f32 %v186_v19, %v186_v19 }
 0x126   :  { %v189_v22 = vsub.f32 %v187_v20, %v188_v21 }
 0x128   :  { %v190_v17 = vmax.f32 %v189_v22, 0.0 }
 0x12a   :  { %v192_v23 = vadd.f32 1e-05, %v190_v17 }
 0x12c   :  { %1032 = vrsqrt.f32 %v192_v23 }
 0x135   :  { %v381_v54 = vpop.f32.mrf.mxu0 }
 0x137   :  { %v917_v55 = vpop.f32.mrf.mxu0 }
 0x139   :  { %v1033_v28 = vpop.eup %1032 }
 0x13a   :  { %v194_v29 = vmul.f32 %v1033_v28, %v191_v26 }
 0x13c   :  { %v202_v31 = vrot.slane %v194_v29, %v1305_v27  ;;  %v196_v32 = vmul.f32 %v194_v29, %v186_v19 }
 0x13e   :  { %v197_v33 = vsub.f32 %v195_v30, %v196_v32  ;;  %v204_v34 = vmul.f32 %v202_v31, %v169_v3  ;;  %v604_v3 = vld [vmem:[#allocation8 + $0x138] sm:$0xff] }
 0x140   :  { %v209_v35 = vrot.slane %v197_v33, %v1305_v27 }
 0x142   :  { %v211_v36 = vadd.f32 %v209_v35, %v204_v34  ;;  %v403_v35 = vld [vmem:[%s1369_s5] sm:$0x1] }
 0x144   :  { %v212_v37 = vmax.f32 %v211_v36, 0.0 }
 0x146   :  { %881 = vmatmul.mubr.f32.vlgmr.msra.gmra.mxu1 %v212_v37 }
 0x147   :  { %919 = vmatpush3.msra.mxu1 %v456_v38  ;;  %950 = vmatprep.mubr.msk.f32.mxu1 %vm1151_vm0, %v1150_v0  ;;  %v407_v38 = vld [vmem:[%s1370_s6] sm:$0x1]  ;;  %s1116_s6 = scalar_lea.vmem %s700_s14, 128 }
 0x148   :  { %920 = vmatprep.subr.mxu1 %v1150_v0  ;;  %p1117_p6 = scmp.ne.s32.totalorder %s700_s14, %s1116_s6  ;;  %p1122_p8 = scmp.lt.s32.totalorder %s1116_s6, %s1116_s6 }
 0x149   :  { %921 = vmatpush3.msra.mxu1 %v455_v39 }
 0x14a   :  { %922 = vmatprep.subr.mxu1 %v1150_v0  ;;  %p1123_p9 = por %p1122_p8, %p1121_p7 }
 0x14b   :  { %923 = vmatpush3.msra.mxu1 %v454_v40 }
 0x14c   :  { %924 = vmatprep.subr.mxu1 %v1150_v0  ;;  %p1124_p10 = pnand %p1123_p9, %p1117_p6 }
 0x14d   :  { %925 = vmatpush3.msra.mxu1 %v453_v41 }
 0x14e   :  { %926 = vmatprep.subr.mxu1 %v1150_v0 }
 0x14f   :  { %927 = vmatpush3.msra.mxu1 %v452_v42 }
 0x150   :  { %928 = vmatprep.subr.mxu1 %v1150_v0 }
 0x151   :  { %929 = vmatpush3.msra.mxu1 %v451_v43 }
 0x152   :  { %930 = vmatprep.subr.mxu1 %v1150_v0 }
 0x153   :  { %931 = vmatpush3.msra.mxu1 %v450_v44 }
 0x154   :  { %932 = vmatprep.subr.mxu1 %v1150_v0 }
 0x155   :  { %933 = vmatpush3.msra.mxu1 %v449_v45  ;;  %v1337_v62 = vpop.f32.mrf.mxu0 }
 0x156   :  { %934 = vmatprep.subr.mxu1 %v1150_v0 }
 0x157   :  { %935 = vmatpush3.msra.mxu1 %v448_v46  ;;  %v987_v2 = vpop.f32.mrf.mxu0 }
 0x158   :  { %936 = vmatprep.subr.mxu1 %v1150_v0 }
 0x159   :  { %937 = vmatpush3.msra.mxu1 %v447_v47 }
 0x15a   :  { %938 = vmatprep.subr.mxu1 %v1150_v0 }
 0x15b   :  { %939 = vmatpush3.msra.mxu1 %v446_v48  ;;  %v710_v48 = vld [vmem:[%s1372_s8] ss:$0 sm:$0xff] }
 0x15c   :  { %940 = vmatprep.subr.mxu1 %v1150_v0 }
 0x15d   :  { %941 = vmatpush3.msra.mxu1 %v445_v49 }
 0x15e   :  { %942 = vmatprep.subr.mxu1 %v1150_v0 }
 0x15f   :  { %943 = vmatpush3.msra.mxu1 %v444_v50 }
 0x160   :  { %944 = vmatprep.subr.mxu1 %v1150_v0 }
 0x161   :  { %945 = vmatpush3.msra.mxu1 %v443_v51 }
 0x162   :  { %946 = vmatprep.subr.mxu1 %v1150_v0 }
 0x163   :  { %947 = vmatpush3.msra.mxu1 %v442_v52 }
 0x164   :  { %948 = vmatprep.subr.mxu1 %v1150_v0 }
 0x165   :  { %949 = vmatpush3.msra.mxu1 %v441_v53 }
 0x166   :  { %951 = vmatmul.mubr.f32.vlgmr.msra.gmra.mxu1 %v212_v37  ;;  %988 = vmatprep.subr.mxu1 %v1150_v0 }
 0x167   :  { %1020 = vmatprep.mubr.msk.f32.mxu1 %vm1151_vm0, %v1150_v0  ;;  %989 = vmatpush3.msra.mxu1 %v612_v56 }
 0x168   :  { %990 = vmatprep.subr.mxu1 %v1150_v0 }
 0x169   :  { %991 = vmatpush3.msra.mxu1 %v611_v57 }
 0x16a   :  { %992 = vmatprep.subr.mxu1 %v1150_v0 }
 0x16b   :  { %993 = vmatpush3.msra.mxu1 %v610_v58 }
 0x16c   :  { %994 = vmatprep.subr.mxu1 %v1150_v0 }
 0x16d   :  { %995 = vmatpush3.msra.mxu1 %v609_v59 }
 0x16e   :  { %996 = vmatprep.subr.mxu1 %v1150_v0 }
 0x16f   :  { %997 = vmatpush3.msra.mxu1 %v608_v60 }
 0x170   :  { %998 = vmatprep.subr.mxu1 %v1150_v0 }
 0x171   :  { %999 = vmatpush3.msra.mxu1 %v607_v61 }
 0x172   :  { %1000 = vmatprep.subr.mxu1 %v1150_v0 }
 0x173   :  { %1001 = vmatpush3.msra.mxu1 %v606_v63 }
 0x174   :  { %1002 = vmatprep.subr.mxu1 %v1150_v0 }
 0x175   :  { %1003 = vmatpush3.msra.mxu1 %v605_v1 }
 0x176   :  { %1004 = vmatprep.subr.mxu1 %v1150_v0 }
 0x177   :  { %1005 = vmatpush3.msra.mxu1 %v604_v3 }
 0x178   :  { %1006 = vmatprep.subr.mxu1 %v1150_v0 }
 0x179   :  { %1007 = vmatpush3.msra.mxu1 %v603_v4 }
 0x17a   :  { %1008 = vmatprep.subr.mxu1 %v1150_v0 }
 0x17b   :  { %1009 = vmatpush3.msra.mxu1 %v602_v5 }
 0x17c   :  { %1010 = vmatprep.subr.mxu1 %v1150_v0 }
 0x17d   :  { %1011 = vmatpush3.msra.mxu1 %v601_v6 }
 0x17e   :  { %1012 = vmatprep.subr.mxu1 %v1150_v0 }
 0x17f   :  { %1013 = vmatpush3.msra.mxu1 %v600_v7 }
 0x180   :  { %1014 = vmatprep.subr.mxu1 %v1150_v0 }
 0x181   :  { %1015 = vmatpush3.msra.mxu1 %v599_v8 }
 0x182   :  { %1016 = vmatprep.subr.mxu1 %v1150_v0 }
 0x183   :  { %1017 = vmatpush3.msra.mxu1 %v598_v9 }
 0x184   :  { %1018 = vmatprep.subr.mxu1 %v1150_v0 }
 0x185   :  { %1019 = vmatpush3.msra.mxu1 %v597_v10 }
 0x206   :  { %v311_v11 = vpop.f32.mrf.mxu1 }
 0x207   :  { %v382_v12 = vadd.f32 %v381_v54, %v311_v11 }
 0x208   :  { %v882_v13 = vpop.f32.mrf.mxu1 }
 0x209   :  { %v385_v14 = vrot.slane %v382_v12, 4  ;;  %v391_v15 = vmul.f32 %v382_v12, %v382_v12 }
 0x20b   :  { %v386_v16 = vadd.f32 %v385_v14, %v382_v12  ;;  %v392_v18 = vrot.slane %v391_v15, 4 }
 0x20d   :  { %v387_v19 = vrot.slane %v386_v16, 2  ;;  %v393_v20 = vadd.f32 %v392_v18, %v391_v15 }
 0x20f   :  { %v388_v21 = vadd.f32 %v387_v19, %v386_v16  ;;  %v394_v22 = vrot.slane %v393_v20, 2 }
 0x211   :  { %v389_v17 = vrot.slane %v388_v21, 1  ;;  %v395_v23 = vadd.f32 %v394_v22, %v393_v20 }
 0x213   :  { %v390_v24 = vadd.f32 %v389_v17, %v388_v21  ;;  %v396_v25 = vrot.slane %v395_v23, 1 }
 0x215   :  { %v397_v26 = vadd.f32 %v396_v25, %v395_v23  ;;  %v398_v28 = vmul.f32 0.125, %v390_v24 }
 0x217   :  { %v399_v29 = vmul.f32 0.125, %v397_v26  ;;  %v400_v0 = vmul.f32 %v398_v28, %v398_v28 }
 0x219   :  { %v401_v30 = vsub.f32 %v399_v29, %v400_v0 }
 0x21b   :  { %v402_v31 = vmax.f32 %v401_v30, 0.0 }
 0x21d   :  { %v404_v32 = vadd.f32 1e-05, %v402_v31 }
 0x21f   :  { %1034 = vrsqrt.f32 %v404_v32 }
 0x226   :  { %v523_v33 = vpop.f32.mrf.mxu1 }
 0x227   :  { %v594_v46 = vadd.f32 %v1337_v62, %v523_v33 }
 0x228   :  { %v952_v34 = vpop.f32.mrf.mxu1 }
 0x22c   :  { %v1035_v36 = vpop.eup %1034 }
 0x22d   :  { %v406_v37 = vmul.f32 %v1035_v36, %v403_v35 }
 0x22f   :  { %v414_v39 = vrot.slane %v406_v37, %v1305_v27  ;;  %v408_v40 = vmul.f32 %v406_v37, %v398_v28 }
 0x231   :  { %v409_v41 = vsub.f32 %v407_v38, %v408_v40  ;;  %v416_v42 = vmul.f32 %v414_v39, %v382_v12 }
 0x233   :  { %v421_v43 = vrot.slane %v409_v41, %v1305_v27 }
 0x235   :  { %v423_v44 = vadd.f32 %v421_v43, %v416_v42 }
 0x237   :  { %v424_v45 = vmax.f32 %v423_v44, 0.0 }
 0x239   :  { %1021 = vmatmul.mubr.f32.vlgmr.msra.gmra.mxu1 %v424_v45 }
 0x2f9   :  { %v679_v47 = vpop.f32.mrf.mxu1 }
 0x2fa   :  { %v683_v49 = vadd.f32 %v679_v47, %v594_v46 }
 0x2fb   :  { %v1022_v50 = vpop.f32.mrf.mxu1 }
 0x2fc   :  { %v691_v51 = vadd.f32 %v710_v48, %v683_v49 }
 0x2fe   :  { %692 = vst [vmem:[#allocation10] sm:$0xff] %v691_v51 }
 0x2ff   :  { %1127 = shalt.err (!%p1124_p10)
}
 0x300   :  { %702 = dma.vmem_to_hbm [thread:$0]  %s700_s14, 128, %s1373_s9, [#allocation4]  }
 0x301   :  { %1142 = dma.done.wait [#allocation4], 128  }
 0x302   :  { %1143 = vsyncadd [#allocation4], 4294967168 }
 0x303   :  { %706 = vsyncpa [#allocation3], 1 }
 0x304   :  { %707 = vsyncpa [#allocation6], 1 }
 0x305   :  { %708 = vsyncpa [#allocation9], 1 }
 0x306   :  { %709 = vsyncpa [#allocation4], 1 }

</bundles_post_ra>
